<compile_context>
chip_gen: v7x
topology: tpu7x:2x2x1
jax: 0.10.0
libtpu: 0.0.40
codegen_flags: <defaults>
</compile_context>

<pallas_src>
import functools

import jax
import jax.numpy as jnp
from jax.experimental import pallas as pl
from jax.experimental.pallas import tpu as pltpu


def _round_up(x, m):
    return ((x + m - 1) // m) * m


def _deconv_bn_relu_kernel(x_ref, w_ref, shift_ref, o_ref, *, Wp, Mv_pad):
    # x_ref:     (Cin_pad, Lc)            bf16  flattened (rows+halo, W+2) chunk
    # w_ref:     (16, Cout_pad, Cin_pad)  bf16  BN-scale-folded per-(parity,tap) weights
    # shift_ref: (Cout_pad, 1)            f32   folded conv-bias + BN shift
    # o_ref:     (4, Cout_pad, Mv_pad)    f32   4 parity planes, lane-dense
    #
    # Tap (ey, ex) of the 3x3 shift neighbourhood is a constant-offset lane
    # slice of the flattened chunk (stride of one image row is Wp = W + 2).
    xs = {}
    for ey in range(3):
        for ex in range(3):
            off = ey * Wp + ex
            xs[(ey, ex)] = x_ref[:, off:off + Mv_pad]
    shift = shift_ref[...]
    for a in range(2):
        for b in range(2):
            acc = None
            for dy in range(2):
                for dx in range(2):
                    t = ((a * 2 + b) * 2 + dy) * 2 + dx
                    d = jnp.dot(w_ref[t], xs[(a + dy, b + dx)],
                                preferred_element_type=jnp.float32)   # MXU
                    acc = d if acc is None else acc + d
            o_ref[a * 2 + b] = jnp.maximum(acc + shift, 0.0)


def ico_deconv_module(x_nchw, weight, conv_bias, bn_gamma, bn_beta, bn_mean,
                      bn_var, *, kernel_size=4, scale_factor=2, eps=1e-5,
                      target_lanes=1024):
    """Forward pass of IcoDeconvModule. x_nchw: (N, Cin, H, W) float32.

    weight: PyTorch ConvTranspose2d layout (Cin, Cout, kH, kW).
    Returns (N, Cout, scale_factor*H, scale_factor*W) in NCHW.
    """
    N, Cin, H, W = x_nchw.shape
    Cout = weight.shape[1]
    k, s = kernel_size, scale_factor
    # Sub-pixel decomposition below is specialized to the module defaults.
    assert k == 4 and s == 2, "sub-pixel path implemented for kernel_size=4, scale_factor=2"
    OH, OW = H * s, W * s
    Wp = W + 2                                  # padded row length (flatten stride)

    # ---- fold conv bias + eval-mode BatchNorm into per-channel scale/shift ----
    scale = (bn_gamma / jnp.sqrt(bn_var + eps)).astype(jnp.float32)        # (Cout,)
    shift = ((conv_bias - bn_mean) * scale + bn_beta).astype(jnp.float32)  # (Cout,)

    Cin_pad = _round_up(Cin, 8)
    Cout_pad = _round_up(Cout, 8)

    # ---- per-(parity, tap) sub-pixel weights ----------------------------------
    # y[n, co, 2*qy+a, 2*qx+b] =
    #   sum_{dy,dx,ci} xpad[n, ci, qy+a+dy, qx+b+dx] * W[ci, co, 3-a-2dy, 3-b-2dx]
    # (xpad = input zero-padded by 1 on each spatial side.)
    w_scaled = weight.astype(jnp.float32) * scale[None, :, None, None]     # (Cin,Cout,4,4)
    mats = []
    for a in range(2):
        for b in range(2):
            for dy in range(2):
                for dx in range(2):
                    mats.append(w_scaled[:, :, 3 - a - 2 * dy, 3 - b - 2 * dx].T)  # (Cout,Cin)
    w16 = jnp.stack(mats, axis=0)                                          # (16,Cout,Cin)
    w16 = jnp.pad(w16, ((0, 0), (0, Cout_pad - Cout), (0, Cin_pad - Cin)))
    w16 = w16.astype(jnp.bfloat16)
    shift_col = jnp.pad(shift, (0, Cout_pad - Cout)).reshape(Cout_pad, 1)

    # ---- row-chunk tiling ------------------------------------------------------
    th = max(1, min(H, target_lanes // Wp))     # input rows per chunk (~1024 lanes)
    T = -(-H // th)
    H_pad = T * th
    Mv = th * Wp                                # valid flattened lanes per chunk
    Mv_pad = _round_up(Mv, 128)                 # lane-dense output width
    halo = 2 * Wp + 2                           # max tap offset
    Lc = _round_up(Mv_pad + halo, 128)          # flattened chunk length

    # ---- pad + flatten input into overlapping row-chunks (cheap, ~1.1x input) --
    xb = x_nchw.astype(jnp.bfloat16)
    xp = jnp.pad(xb, ((0, 0), (0, Cin_pad - Cin), (1, 1 + H_pad - H), (1, 1)))
    row_idx = jnp.arange(T)[:, None] * th + jnp.arange(th + 2)[None, :]    # (T, th+2)
    xc = xp[:, :, row_idx, :]                            # (N, Cin_pad, T, th+2, Wp)
    xc = jnp.transpose(xc, (0, 2, 1, 3, 4)).reshape(N, T, Cin_pad, (th + 2) * Wp)
    xc = jnp.pad(xc, ((0, 0), (0, 0), (0, 0), (0, Lc - (th + 2) * Wp)))

    # ---- VMEM budget: only raise the scoped limit when blocks are large --------
    est = (2 * (Cin_pad * Lc * 2 + 4 * Cout_pad * Mv_pad * 4)
           + 16 * Cout_pad * Cin_pad * 2 + 9 * Cin_pad * Mv_pad * 2 + (1 << 20))
    vmem_limit = int(min(1.5 * est, 120 * 2 ** 20)) if est > 28 * 2 ** 20 else None

    kernel = functools.partial(_deconv_bn_relu_kernel, Wp=Wp, Mv_pad=Mv_pad)
    out = pl.pallas_call(
        kernel,
        out_shape=jax.ShapeDtypeStruct((N, T, 4, Cout_pad, Mv_pad), jnp.float32),
        grid_spec=pltpu.PrefetchScalarGridSpec(
            num_scalar_prefetch=0,
            grid=(N, T),
            in_specs=[
                # one flattened row-chunk per (n, t)
                pl.BlockSpec((None, None, Cin_pad, Lc), lambda n, t: (n, t, 0, 0)),
                # grid-invariant weights / shift: DMA'd once, reused
                pl.BlockSpec((16, Cout_pad, Cin_pad), lambda n, t: (0, 0, 0)),
                pl.BlockSpec((Cout_pad, 1), lambda n, t: (0, 0)),
            ],
            out_specs=pl.BlockSpec((None, None, 4, Cout_pad, Mv_pad),
                                   lambda n, t: (n, t, 0, 0, 0)),
        ),
        compiler_params=pltpu.CompilerParams(
            dimension_semantics=("parallel", "parallel"),
            vmem_limit_bytes=vmem_limit),
    )(xc, w16, shift_col)

    # ---- pixel-shuffle the 4 parity planes back into NCHW ---------------------
    out = out[:, :, :, :Cout, :Mv].reshape(N, T, 2, 2, Cout, th, Wp)[..., :W]
    out = jnp.transpose(out, (0, 4, 1, 5, 2, 6, 3))      # (n, co, t, r, a, qx, b)
    out = out.reshape(N, Cout, 2 * H_pad, 2 * W)[:, :, :OH, :]
    return out


def _reference(x_nchw, weight, conv_bias, bn_gamma, bn_beta, bn_mean, bn_var,
               *, kernel_size=4, scale_factor=2, eps=1e-5):
    """Independent pure-JAX (f32) reference using lax dilated convolution."""
    k, s = kernel_size, scale_factor
    p = (k - s) // 2
    pp = k - 1 - p
    x = jnp.transpose(x_nchw, (0, 2, 3, 1))                      # NHWC
    wf = jnp.transpose(weight[:, :, ::-1, ::-1], (2, 3, 0, 1))   # HWIO
    y = jax.lax.conv_general_dilated(
        x, wf, window_strides=(1, 1),
        padding=((pp, pp), (pp, pp)),
        lhs_dilation=(s, s), rhs_dilation=(1, 1),
        dimension_numbers=('NHWC', 'HWIO', 'NHWC'),
        precision=jax.lax.Precision.HIGHEST)
    y = y + conv_bias
    y = (y - bn_mean) * (bn_gamma / jnp.sqrt(bn_var + eps)) + bn_beta
    y = jnp.maximum(y, 0.0)
    return jnp.transpose(y, (0, 3, 1, 2))


if __name__ == "__main__":
    # Small deterministic example: N=2, Cin=4, Cout=8, H=W=16 -> output 32x32.
    key = jax.random.PRNGKey(0)
    k_x, k_w, k_b, k_g, k_be, k_m, k_v = jax.random.split(key, 7)

    N, Cin, Cout, H, W = 2, 4, 8, 16, 16
    ksz = 4

    x = jax.random.normal(k_x, (N, Cin, H, W), dtype=jnp.float32)
    weight = 0.1 * jax.random.normal(k_w, (Cin, Cout, ksz, ksz), jnp.float32)
    conv_bias = 0.05 * jax.random.normal(k_b, (Cout,), jnp.float32)
    bn_gamma = 1.0 + 0.1 * jax.random.normal(k_g, (Cout,), jnp.float32)
    bn_beta = 0.1 * jax.random.normal(k_be, (Cout,), jnp.float32)
    bn_mean = 0.1 * jax.random.normal(k_m, (Cout,), jnp.float32)
    bn_var = 1.0 + 0.5 * jax.random.uniform(k_v, (Cout,), jnp.float32)

    fwd = jax.jit(functools.partial(ico_deconv_module,
                                    kernel_size=ksz, scale_factor=2))
    out = fwd(x, weight, conv_bias, bn_gamma, bn_beta, bn_mean, bn_var)
    out = jax.block_until_ready(out)

    ref = _reference(x, weight, conv_bias, bn_gamma, bn_beta, bn_mean, bn_var,
                     kernel_size=ksz, scale_factor=2)

    assert out.shape == (N, Cout, 2 * H, 2 * W), out.shape
    # bf16 MXU operands (f32 accumulation) -> tolerance loosened vs full-f32.
    assert jnp.allclose(out, ref, atol=3e-2, rtol=3e-2), (
        float(jnp.max(jnp.abs(out - ref))))

    print("KERNEL_OK")
</pallas_src>

<mosaic_0001>
module attributes {stable_mosaic.version = 11 : i64} {
  func.func @_deconv_bn_relu_kernel(%arg0: i32, %arg1: i32, %arg2: memref<1x1x8x512xbf16, #tpu.memory_space<vmem>>, %arg3: memref<16x8x8xbf16, #tpu.memory_space<vmem>>, %arg4: memref<8x1xf32, #tpu.memory_space<vmem>>, %arg5: memref<1x1x4x8x384xf32, #tpu.memory_space<vmem>>) attributes {dimension_semantics = [#tpu.dimension_semantics<parallel>, #tpu.dimension_semantics<parallel>], iteration_bounds = array<i64: 2, 1>, scalar_prefetch = 0 : i64, scratch_operands = 0 : i64, tpu.core_type = #tpu.core_type<tc>, window_params = [{transform_indices = @transform_0, window_bounds = array<i64: 1, 1, 8, 512>}, {pipeline_mode = #tpu.pipeline_mode<synchronous>, transform_indices = @transform_1, window_bounds = array<i64: 16, 8, 8>}, {pipeline_mode = #tpu.pipeline_mode<synchronous>, transform_indices = @transform_2, window_bounds = array<i64: 8, 1>}, {transform_indices = @transform_3, window_bounds = array<i64: 1, 1, 4, 8, 384>}]} {
    %c0 = arith.constant 0 : index
    %c0_0 = arith.constant 0 : index
    %c0_1 = arith.constant 0 : index
    %c0_2 = arith.constant 0 : index
    %0 = vector.load %arg2[%c0, %c0_0, %c0_1, %c0_2] : memref<1x1x8x512xbf16, #tpu.memory_space<vmem>>, vector<1x1x8x384xbf16>
    %1 = vector.shape_cast %0 : vector<1x1x8x384xbf16> to vector<8x384xbf16>
    %c0_3 = arith.constant 0 : index
    %c0_4 = arith.constant 0 : index
    %c0_5 = arith.constant 0 : index
    %c1 = arith.constant 1 : index
    %2 = vector.load %arg2[%c0_3, %c0_4, %c0_5, %c1] : memref<1x1x8x512xbf16, #tpu.memory_space<vmem>>, vector<1x1x8x384xbf16>
    %3 = vector.shape_cast %2 : vector<1x1x8x384xbf16> to vector<8x384xbf16>
    %c0_6 = arith.constant 0 : index
    %c0_7 = arith.constant 0 : index
    %c0_8 = arith.constant 0 : index
    %c2 = arith.constant 2 : index
    %4 = vector.load %arg2[%c0_6, %c0_7, %c0_8, %c2] : memref<1x1x8x512xbf16, #tpu.memory_space<vmem>>, vector<1x1x8x384xbf16>
    %5 = vector.shape_cast %4 : vector<1x1x8x384xbf16> to vector<8x384xbf16>
    %c0_9 = arith.constant 0 : index
    %c0_10 = arith.constant 0 : index
    %c0_11 = arith.constant 0 : index
    %c18 = arith.constant 18 : index
    %6 = vector.load %arg2[%c0_9, %c0_10, %c0_11, %c18] : memref<1x1x8x512xbf16, #tpu.memory_space<vmem>>, vector<1x1x8x384xbf16>
    %7 = vector.shape_cast %6 : vector<1x1x8x384xbf16> to vector<8x384xbf16>
    %c0_12 = arith.constant 0 : index
    %c0_13 = arith.constant 0 : index
    %c0_14 = arith.constant 0 : index
    %c19 = arith.constant 19 : index
    %8 = vector.load %arg2[%c0_12, %c0_13, %c0_14, %c19] : memref<1x1x8x512xbf16, #tpu.memory_space<vmem>>, vector<1x1x8x384xbf16>
    %9 = vector.shape_cast %8 : vector<1x1x8x384xbf16> to vector<8x384xbf16>
    %c0_15 = arith.constant 0 : index
    %c0_16 = arith.constant 0 : index
    %c0_17 = arith.constant 0 : index
    %c20 = arith.constant 20 : index
    %10 = vector.load %arg2[%c0_15, %c0_16, %c0_17, %c20] : memref<1x1x8x512xbf16, #tpu.memory_space<vmem>>, vector<1x1x8x384xbf16>
    %11 = vector.shape_cast %10 : vector<1x1x8x384xbf16> to vector<8x384xbf16>
    %c0_18 = arith.constant 0 : index
    %c0_19 = arith.constant 0 : index
    %c0_20 = arith.constant 0 : index
    %c36 = arith.constant 36 : index
    %12 = vector.load %arg2[%c0_18, %c0_19, %c0_20, %c36] : memref<1x1x8x512xbf16, #tpu.memory_space<vmem>>, vector<1x1x8x384xbf16>
    %13 = vector.shape_cast %12 : vector<1x1x8x384xbf16> to vector<8x384xbf16>
    %c0_21 = arith.constant 0 : index
    %c0_22 = arith.constant 0 : index
    %c0_23 = arith.constant 0 : index
    %c37 = arith.constant 37 : index
    %14 = vector.load %arg2[%c0_21, %c0_22, %c0_23, %c37] : memref<1x1x8x512xbf16, #tpu.memory_space<vmem>>, vector<1x1x8x384xbf16>
    %15 = vector.shape_cast %14 : vector<1x1x8x384xbf16> to vector<8x384xbf16>
    %c0_24 = arith.constant 0 : index
    %c0_25 = arith.constant 0 : index
    %c0_26 = arith.constant 0 : index
    %c38 = arith.constant 38 : index
    %16 = vector.load %arg2[%c0_24, %c0_25, %c0_26, %c38] : memref<1x1x8x512xbf16, #tpu.memory_space<vmem>>, vector<1x1x8x384xbf16>
    %17 = vector.shape_cast %16 : vector<1x1x8x384xbf16> to vector<8x384xbf16>
    %c0_27 = arith.constant 0 : index
    %c0_28 = arith.constant 0 : index
    %18 = vector.load %arg4[%c0_27, %c0_28] : memref<8x1xf32, #tpu.memory_space<vmem>>, vector<8x1xf32>
    %c0_29 = arith.constant 0 : index
    %c0_30 = arith.constant 0 : index
    %c0_31 = arith.constant 0 : index
    %19 = vector.load %arg3[%c0_29, %c0_30, %c0_31] : memref<16x8x8xbf16, #tpu.memory_space<vmem>>, vector<1x8x8xbf16>
    %20 = vector.shape_cast %19 : vector<1x8x8xbf16> to vector<8x8xbf16>
    %cst = arith.constant dense<0.000000e+00> : vector<8x384xf32>
    %21 = tpu.matmul %20, %1, %cst {dimension_numbers = #tpu.dot_dimension_numbers<[1], [0], [0], [1], [0, 0, 1, 1], [], []>} : vector<8x8xbf16>, vector<8x384xbf16>, vector<8x384xf32> -> vector<8x384xf32>
    %c1_32 = arith.constant 1 : index
    %c0_33 = arith.constant 0 : index
    %c0_34 = arith.constant 0 : index
    %22 = vector.load %arg3[%c1_32, %c0_33, %c0_34] : memref<16x8x8xbf16, #tpu.memory_space<vmem>>, vector<1x8x8xbf16>
    %23 = vector.shape_cast %22 : vector<1x8x8xbf16> to vector<8x8xbf16>
    %cst_35 = arith.constant dense<0.000000e+00> : vector<8x384xf32>
    %24 = tpu.matmul %23, %3, %cst_35 {dimension_numbers = #tpu.dot_dimension_numbers<[1], [0], [0], [1], [0, 0, 1, 1], [], []>} : vector<8x8xbf16>, vector<8x384xbf16>, vector<8x384xf32> -> vector<8x384xf32>
    %25 = arith.addf %21, %24 : vector<8x384xf32>
    %c2_36 = arith.constant 2 : index
    %c0_37 = arith.constant 0 : index
    %c0_38 = arith.constant 0 : index
    %26 = vector.load %arg3[%c2_36, %c0_37, %c0_38] : memref<16x8x8xbf16, #tpu.memory_space<vmem>>, vector<1x8x8xbf16>
    %27 = vector.shape_cast %26 : vector<1x8x8xbf16> to vector<8x8xbf16>
    %cst_39 = arith.constant dense<0.000000e+00> : vector<8x384xf32>
    %28 = tpu.matmul %27, %7, %cst_39 {dimension_numbers = #tpu.dot_dimension_numbers<[1], [0], [0], [1], [0, 0, 1, 1], [], []>} : vector<8x8xbf16>, vector<8x384xbf16>, vector<8x384xf32> -> vector<8x384xf32>
    %29 = arith.addf %25, %28 : vector<8x384xf32>
    %c3 = arith.constant 3 : index
    %c0_40 = arith.constant 0 : index
    %c0_41 = arith.constant 0 : index
    %30 = vector.load %arg3[%c3, %c0_40, %c0_41] : memref<16x8x8xbf16, #tpu.memory_space<vmem>>, vector<1x8x8xbf16>
    %31 = vector.shape_cast %30 : vector<1x8x8xbf16> to vector<8x8xbf16>
    %cst_42 = arith.constant dense<0.000000e+00> : vector<8x384xf32>
    %32 = tpu.matmul %31, %9, %cst_42 {dimension_numbers = #tpu.dot_dimension_numbers<[1], [0], [0], [1], [0, 0, 1, 1], [], []>} : vector<8x8xbf16>, vector<8x384xbf16>, vector<8x384xf32> -> vector<8x384xf32>
    %33 = arith.addf %29, %32 : vector<8x384xf32>
    %34 = vector.broadcast %18 : vector<8x1xf32> to vector<8x384xf32>
    %35 = arith.addf %33, %34 : vector<8x384xf32>
    %cst_43 = arith.constant 0.000000e+00 : f32
    %36 = vector.broadcast %cst_43 : f32 to vector<8x384xf32>
    %37 = arith.maximumf %35, %36 : vector<8x384xf32>
    %c0_44 = arith.constant 0 : index
    %c0_45 = arith.constant 0 : index
    %c0_46 = arith.constant 0 : index
    %c0_47 = arith.constant 0 : index
    %c0_48 = arith.constant 0 : index
    %38 = vector.load %arg5[%c0_44, %c0_45, %c0_46, %c0_47, %c0_48] : memref<1x1x4x8x384xf32, #tpu.memory_space<vmem>>, vector<1x1x1x8x384xf32>
    %39 = vector.shape_cast %38 : vector<1x1x1x8x384xf32> to vector<8x384xf32>
    %40 = vector.shape_cast %37 : vector<8x384xf32> to vector<1x1x1x8x384xf32>
    tpu.vector_store %arg5[%c0_44, %c0_45, %c0_46, %c0_47, %c0_48], %40 {strides = array<i32>} : memref<1x1x4x8x384xf32, #tpu.memory_space<vmem>>, vector<1x1x1x8x384xf32>,
    %c4 = arith.constant 4 : index
    %c0_49 = arith.constant 0 : index
    %c0_50 = arith.constant 0 : index
    %41 = vector.load %arg3[%c4, %c0_49, %c0_50] : memref<16x8x8xbf16, #tpu.memory_space<vmem>>, vector<1x8x8xbf16>
    %42 = vector.shape_cast %41 : vector<1x8x8xbf16> to vector<8x8xbf16>
    %cst_51 = arith.constant dense<0.000000e+00> : vector<8x384xf32>
    %43 = tpu.matmul %42, %3, %cst_51 {dimension_numbers = #tpu.dot_dimension_numbers<[1], [0], [0], [1], [0, 0, 1, 1], [], []>} : vector<8x8xbf16>, vector<8x384xbf16>, vector<8x384xf32> -> vector<8x384xf32>
    %c5 = arith.constant 5 : index
    %c0_52 = arith.constant 0 : index
    %c0_53 = arith.constant 0 : index
    %44 = vector.load %arg3[%c5, %c0_52, %c0_53] : memref<16x8x8xbf16, #tpu.memory_space<vmem>>, vector<1x8x8xbf16>
    %45 = vector.shape_cast %44 : vector<1x8x8xbf16> to vector<8x8xbf16>
    %cst_54 = arith.constant dense<0.000000e+00> : vector<8x384xf32>
    %46 = tpu.matmul %45, %5, %cst_54 {dimension_numbers = #tpu.dot_dimension_numbers<[1], [0], [0], [1], [0, 0, 1, 1], [], []>} : vector<8x8xbf16>, vector<8x384xbf16>, vector<8x384xf32> -> vector<8x384xf32>
    %47 = arith.addf %43, %46 : vector<8x384xf32>
    %c6 = arith.constant 6 : index
    %c0_55 = arith.constant 0 : index
    %c0_56 = arith.constant 0 : index
    %48 = vector.load %arg3[%c6, %c0_55, %c0_56] : memref<16x8x8xbf16, #tpu.memory_space<vmem>>, vector<1x8x8xbf16>
    %49 = vector.shape_cast %48 : vector<1x8x8xbf16> to vector<8x8xbf16>
    %cst_57 = arith.constant dense<0.000000e+00> : vector<8x384xf32>
    %50 = tpu.matmul %49, %9, %cst_57 {dimension_numbers = #tpu.dot_dimension_numbers<[1], [0], [0], [1], [0, 0, 1, 1], [], []>} : vector<8x8xbf16>, vector<8x384xbf16>, vector<8x384xf32> -> vector<8x384xf32>
    %51 = arith.addf %47, %50 : vector<8x384xf32>
    %c7 = arith.constant 7 : index
    %c0_58 = arith.constant 0 : index
    %c0_59 = arith.constant 0 : index
    %52 = vector.load %arg3[%c7, %c0_58, %c0_59] : memref<16x8x8xbf16, #tpu.memory_space<vmem>>, vector<1x8x8xbf16>
    %53 = vector.shape_cast %52 : vector<1x8x8xbf16> to vector<8x8xbf16>
    %cst_60 = arith.constant dense<0.000000e+00> : vector<8x384xf32>
    %54 = tpu.matmul %53, %11, %cst_60 {dimension_numbers = #tpu.dot_dimension_numbers<[1], [0], [0], [1], [0, 0, 1, 1], [], []>} : vector<8x8xbf16>, vector<8x384xbf16>, vector<8x384xf32> -> vector<8x384xf32>
    %55 = arith.addf %51, %54 : vector<8x384xf32>
    %56 = vector.broadcast %18 : vector<8x1xf32> to vector<8x384xf32>
    %57 = arith.addf %55, %56 : vector<8x384xf32>
    %cst_61 = arith.constant 0.000000e+00 : f32
    %58 = vector.broadcast %cst_61 : f32 to vector<8x384xf32>
    %59 = arith.maximumf %57, %58 : vector<8x384xf32>
    %c0_62 = arith.constant 0 : index
    %c0_63 = arith.constant 0 : index
    %c1_64 = arith.constant 1 : index
    %c0_65 = arith.constant 0 : index
    %c0_66 = arith.constant 0 : index
    %60 = vector.load %arg5[%c0_62, %c0_63, %c1_64, %c0_65, %c0_66] : memref<1x1x4x8x384xf32, #tpu.memory_space<vmem>>, vector<1x1x1x8x384xf32>
    %61 = vector.shape_cast %60 : vector<1x1x1x8x384xf32> to vector<8x384xf32>
    %62 = vector.shape_cast %59 : vector<8x384xf32> to vector<1x1x1x8x384xf32>
    tpu.vector_store %arg5[%c0_62, %c0_63, %c1_64, %c0_65, %c0_66], %62 {strides = array<i32>} : memref<1x1x4x8x384xf32, #tpu.memory_space<vmem>>, vector<1x1x1x8x384xf32>,
    %c8 = arith.constant 8 : index
    %c0_67 = arith.constant 0 : index
    %c0_68 = arith.constant 0 : index
    %63 = vector.load %arg3[%c8, %c0_67, %c0_68] : memref<16x8x8xbf16, #tpu.memory_space<vmem>>, vector<1x8x8xbf16>
    %64 = vector.shape_cast %63 : vector<1x8x8xbf16> to vector<8x8xbf16>
    %cst_69 = arith.constant dense<0.000000e+00> : vector<8x384xf32>
    %65 = tpu.matmul %64, %7, %cst_69 {dimension_numbers = #tpu.dot_dimension_numbers<[1], [0], [0], [1], [0, 0, 1, 1], [], []>} : vector<8x8xbf16>, vector<8x384xbf16>, vector<8x384xf32> -> vector<8x384xf32>
    %c9 = arith.constant 9 : index
    %c0_70 = arith.constant 0 : index
    %c0_71 = arith.constant 0 : index
    %66 = vector.load %arg3[%c9, %c0_70, %c0_71] : memref<16x8x8xbf16, #tpu.memory_space<vmem>>, vector<1x8x8xbf16>
    %67 = vector.shape_cast %66 : vector<1x8x8xbf16> to vector<8x8xbf16>
    %cst_72 = arith.constant dense<0.000000e+00> : vector<8x384xf32>
    %68 = tpu.matmul %67, %9, %cst_72 {dimension_numbers = #tpu.dot_dimension_numbers<[1], [0], [0], [1], [0, 0, 1, 1], [], []>} : vector<8x8xbf16>, vector<8x384xbf16>, vector<8x384xf32> -> vector<8x384xf32>
    %69 = arith.addf %65, %68 : vector<8x384xf32>
    %c10 = arith.constant 10 : index
    %c0_73 = arith.constant 0 : index
    %c0_74 = arith.constant 0 : index
    %70 = vector.load %arg3[%c10, %c0_73, %c0_74] : memref<16x8x8xbf16, #tpu.memory_space<vmem>>, vector<1x8x8xbf16>
    %71 = vector.shape_cast %70 : vector<1x8x8xbf16> to vector<8x8xbf16>
    %cst_75 = arith.constant dense<0.000000e+00> : vector<8x384xf32>
    %72 = tpu.matmul %71, %13, %cst_75 {dimension_numbers = #tpu.dot_dimension_numbers<[1], [0], [0], [1], [0, 0, 1, 1], [], []>} : vector<8x8xbf16>, vector<8x384xbf16>, vector<8x384xf32> -> vector<8x384xf32>
    %73 = arith.addf %69, %72 : vector<8x384xf32>
    %c11 = arith.constant 11 : index
    %c0_76 = arith.constant 0 : index
    %c0_77 = arith.constant 0 : index
    %74 = vector.load %arg3[%c11, %c0_76, %c0_77] : memref<16x8x8xbf16, #tpu.memory_space<vmem>>, vector<1x8x8xbf16>
    %75 = vector.shape_cast %74 : vector<1x8x8xbf16> to vector<8x8xbf16>
    %cst_78 = arith.constant dense<0.000000e+00> : vector<8x384xf32>
    %76 = tpu.matmul %75, %15, %cst_78 {dimension_numbers = #tpu.dot_dimension_numbers<[1], [0], [0], [1], [0, 0, 1, 1], [], []>} : vector<8x8xbf16>, vector<8x384xbf16>, vector<8x384xf32> -> vector<8x384xf32>
    %77 = arith.addf %73, %76 : vector<8x384xf32>
    %78 = vector.broadcast %18 : vector<8x1xf32> to vector<8x384xf32>
    %79 = arith.addf %77, %78 : vector<8x384xf32>
    %cst_79 = arith.constant 0.000000e+00 : f32
    %80 = vector.broadcast %cst_79 : f32 to vector<8x384xf32>
    %81 = arith.maximumf %79, %80 : vector<8x384xf32>
    %c0_80 = arith.constant 0 : index
    %c0_81 = arith.constant 0 : index
    %c2_82 = arith.constant 2 : index
    %c0_83 = arith.constant 0 : index
    %c0_84 = arith.constant 0 : index
    %82 = vector.load %arg5[%c0_80, %c0_81, %c2_82, %c0_83, %c0_84] : memref<1x1x4x8x384xf32, #tpu.memory_space<vmem>>, vector<1x1x1x8x384xf32>
    %83 = vector.shape_cast %82 : vector<1x1x1x8x384xf32> to vector<8x384xf32>
    %84 = vector.shape_cast %81 : vector<8x384xf32> to vector<1x1x1x8x384xf32>
    tpu.vector_store %arg5[%c0_80, %c0_81, %c2_82, %c0_83, %c0_84], %84 {strides = array<i32>} : memref<1x1x4x8x384xf32, #tpu.memory_space<vmem>>, vector<1x1x1x8x384xf32>,
    %c12 = arith.constant 12 : index
    %c0_85 = arith.constant 0 : index
    %c0_86 = arith.constant 0 : index
    %85 = vector.load %arg3[%c12, %c0_85, %c0_86] : memref<16x8x8xbf16, #tpu.memory_space<vmem>>, vector<1x8x8xbf16>
    %86 = vector.shape_cast %85 : vector<1x8x8xbf16> to vector<8x8xbf16>
    %cst_87 = arith.constant dense<0.000000e+00> : vector<8x384xf32>
    %87 = tpu.matmul %86, %9, %cst_87 {dimension_numbers = #tpu.dot_dimension_numbers<[1], [0], [0], [1], [0, 0, 1, 1], [], []>} : vector<8x8xbf16>, vector<8x384xbf16>, vector<8x384xf32> -> vector<8x384xf32>
    %c13 = arith.constant 13 : index
    %c0_88 = arith.constant 0 : index
    %c0_89 = arith.constant 0 : index
    %88 = vector.load %arg3[%c13, %c0_88, %c0_89] : memref<16x8x8xbf16, #tpu.memory_space<vmem>>, vector<1x8x8xbf16>
    %89 = vector.shape_cast %88 : vector<1x8x8xbf16> to vector<8x8xbf16>
    %cst_90 = arith.constant dense<0.000000e+00> : vector<8x384xf32>
    %90 = tpu.matmul %89, %11, %cst_90 {dimension_numbers = #tpu.dot_dimension_numbers<[1], [0], [0], [1], [0, 0, 1, 1], [], []>} : vector<8x8xbf16>, vector<8x384xbf16>, vector<8x384xf32> -> vector<8x384xf32>
    %91 = arith.addf %87, %90 : vector<8x384xf32>
    %c14 = arith.constant 14 : index
    %c0_91 = arith.constant 0 : index
    %c0_92 = arith.constant 0 : index
    %92 = vector.load %arg3[%c14, %c0_91, %c0_92] : memref<16x8x8xbf16, #tpu.memory_space<vmem>>, vector<1x8x8xbf16>
    %93 = vector.shape_cast %92 : vector<1x8x8xbf16> to vector<8x8xbf16>
    %cst_93 = arith.constant dense<0.000000e+00> : vector<8x384xf32>
    %94 = tpu.matmul %93, %15, %cst_93 {dimension_numbers = #tpu.dot_dimension_numbers<[1], [0], [0], [1], [0, 0, 1, 1], [], []>} : vector<8x8xbf16>, vector<8x384xbf16>, vector<8x384xf32> -> vector<8x384xf32>
    %95 = arith.addf %91, %94 : vector<8x384xf32>
    %c15 = arith.constant 15 : index
    %c0_94 = arith.constant 0 : index
    %c0_95 = arith.constant 0 : index
    %96 = vector.load %arg3[%c15, %c0_94, %c0_95] : memref<16x8x8xbf16, #tpu.memory_space<vmem>>, vector<1x8x8xbf16>
    %97 = vector.shape_cast %96 : vector<1x8x8xbf16> to vector<8x8xbf16>
    %cst_96 = arith.constant dense<0.000000e+00> : vector<8x384xf32>
    %98 = tpu.matmul %97, %17, %cst_96 {dimension_numbers = #tpu.dot_dimension_numbers<[1], [0], [0], [1], [0, 0, 1, 1], [], []>} : vector<8x8xbf16>, vector<8x384xbf16>, vector<8x384xf32> -> vector<8x384xf32>
    %99 = arith.addf %95, %98 : vector<8x384xf32>
    %100 = vector.broadcast %18 : vector<8x1xf32> to vector<8x384xf32>
    %101 = arith.addf %99, %100 : vector<8x384xf32>
    %cst_97 = arith.constant 0.000000e+00 : f32
    %102 = vector.broadcast %cst_97 : f32 to vector<8x384xf32>
    %103 = arith.maximumf %101, %102 : vector<8x384xf32>
    %c0_98 = arith.constant 0 : index
    %c0_99 = arith.constant 0 : index
    %c3_100 = arith.constant 3 : index
    %c0_101 = arith.constant 0 : index
    %c0_102 = arith.constant 0 : index
    %104 = vector.load %arg5[%c0_98, %c0_99, %c3_100, %c0_101, %c0_102] : memref<1x1x4x8x384xf32, #tpu.memory_space<vmem>>, vector<1x1x1x8x384xf32>
    %105 = vector.shape_cast %104 : vector<1x1x1x8x384xf32> to vector<8x384xf32>
    %106 = vector.shape_cast %103 : vector<8x384xf32> to vector<1x1x1x8x384xf32>
    tpu.vector_store %arg5[%c0_98, %c0_99, %c3_100, %c0_101, %c0_102], %106 {strides = array<i32>} : memref<1x1x4x8x384xf32, #tpu.memory_space<vmem>>, vector<1x1x1x8x384xf32>,
    return
  }
  func.func @transform_0(%arg0: i32, %arg1: i32) -> (i32, i32, i32, i32) {
    %c0_i32 = arith.constant 0 : i32
    %c0_i32_0 = arith.constant 0 : i32
    %c0_i32_1 = arith.constant 0 : i32
    return %arg0, %arg1, %c0_i32, %c0_i32_0 : i32, i32, i32, i32
  }
  func.func @transform_1(%arg0: i32, %arg1: i32) -> (i32, i32, i32) {
    %c0_i32 = arith.constant 0 : i32
    %c0_i32_0 = arith.constant 0 : i32
    %c0_i32_1 = arith.constant 0 : i32
    %c0_i32_2 = arith.constant 0 : i32
    return %c0_i32, %c0_i32_0, %c0_i32_1 : i32, i32, i32
  }
  func.func @transform_2(%arg0: i32, %arg1: i32) -> (i32, i32) {
    %c0_i32 = arith.constant 0 : i32
    %c0_i32_0 = arith.constant 0 : i32
    %c0_i32_1 = arith.constant 0 : i32
    return %c0_i32, %c0_i32_0 : i32, i32
  }
  func.func @transform_3(%arg0: i32, %arg1: i32) -> (i32, i32, i32, i32, i32) {
    %c0_i32 = arith.constant 0 : i32
    %c0_i32_0 = arith.constant 0 : i32
    %c0_i32_1 = arith.constant 0 : i32
    %c0_i32_2 = arith.constant 0 : i32
    return %arg0, %arg1, %c0_i32, %c0_i32_0, %c0_i32_1 : i32, i32, i32, i32, i32
  }
}

</mosaic_0001>

<bundles_post_ra>
// kernel: ico_deconv_module.1
= control target key start
LH: loop header
LB: loop body
LE: loop exit
PB: predicated region body
PF: predicated region fallthrough
CT: control target
= control target key end

     0   :  { %s2260_s12 = smov 0   ;;  %s2262_s13 = smov 0   ;;  %s2577_s0 = inlined_call_operand.vmem [shape: bf16[2,1,8,512], index: 0, kind: input, shape index: {}]   ;;  %s2578_s1 = inlined_call_operand.vmem [shape: bf16[16,8,8], index: 1, kind: input, shape index: {}]   ;;  %s2579_s2 = inlined_call_operand.vmem [shape: f32[8,1], index: 2, kind: input, shape index: {}]   ;;  %s2580_s3 = inlined_call_operand.vmem [shape: f32[2,1,4,8,384], index: 3, kind: output, shape index: {}]  }
   0x1   :  { %s2264_s14 = smov 0  }
   0x2 LB: > { %s25_s15 = sadd.s32 1, %s2223_s13  ;;  %p1949_p0 = scmp.ge.s32.totalorder %s2227_s14, 1  ;;  %s2227_s14 = sphi %s2264_s14, %s13_s14   ;;  %s2223_s13 = sphi %s2262_s13, %s2582_s13   ;;  %s2219_s12 = sphi %s2260_s12, %s2581_s12  }
   0x3   : > { %p27_p1 = scmp.ge.s32.totalorder %s25_s15, 2  ;;  %p157_p2 = scmp.lt.s32.totalorder %s2227_s14, 3 }
   0x5   : > { %s2584_s15 = smov (%p27_p1, %s25_s15), 0  ;;  %p158_p3 = pnand %p1949_p0, %p157_p2 }
   0x6   : > { %p189_p4 = scmp.lt.s32.totalorder (!%p158_p3), %s2219_s12, 1  ;;  %v2229_v0 = vmov (!%p158_p3), 0.0   ;;  %v2230_v1 = vmov (!%p158_p3), 0   ;;  %vm2231_vm0 = vmmov (!%p158_p3), 0   ;;  %s2232_s20 = smov (!%p158_p3), 127   ;;  %v212_v8 = vld [vmem:[%s2579_s2] sm:$0xff] (!%p158_p3) }
   0x7   : > { %161 = sbr.rel (%p158_p3) target bundleno = 484 (0x1e4), region = 32  ;;  %2067 = vmatprep.subr.bf16.mxu1 (!%p158_p3), %v2229_v0  ;;  %284 = vmatprep.mubr.bf16.mxu0 (!%p158_p3), %v2230_v1  ;;  %s2233_s21 = smov (!%p158_p3), 110   ;;  %vm234_vm1 = vcmask (!%p158_p3), 1039360   ;;  %vm242_vm2 = vcmask (!%p158_p3), 1043456   ;;  %v1953_v19 = vld [vmem:[%s2578_s1 + $0x4] sm:$0xf] (!%p158_p3) }
   0x8   : > { %2069 = vmatprep.mubr.msk.bf16.mxu1 (!%p158_p3), %vm2231_vm0, %v2229_v0  ;;  %2199 = vset.pattern.permute.xlu0 (!%p158_p3), %v2230_v1  ;;  %s2234_s22 = smov (!%p158_p3), 109   ;;  %s2235_s23 = smov (!%p158_p3), 126   ;;  %vm238_vm3 = vcmask (!%p158_p3), 64512   ;;  %vm444_vm4 = vcmask (!%p158_p3), 900096   ;;  %v213_v29 = vld [vmem:[%s2578_s1] sm:$0xf] (!%p158_p3) }
   0x9   : > { %s2236_s24 = smov (!%p158_p3), 108   ;;  %s2237_s25 = smov (!%p158_p3), 92   ;;  %vm554_vm5 = vcmask (!%p158_p3), 891904   ;;  %v1967_v39 = vld [vmem:[%s2578_s1 + $0x8] sm:$0xf] (!%p158_p3)  ;;  %vm680_vm6 = vcmask (!%p158_p3), 1031168  }
   0xa   : > { %s2238_s26 = smov (!%p158_p3), 91   ;;  %s2239_s27 = smov (!%p158_p3), 90   ;;  %v1971_v49 = vld [vmem:[%s2578_s1 + $0xc] sm:$0xf] (!%p158_p3)  ;;  %v1976_v52 = vld [vmem:[%s2578_s1 + $0x14] sm:$0xf] (!%p158_p3) }
   0xb   : > { %vm960_vm7 = vcmask (!%p158_p3), 883712   ;;  %v1975_v56 = vld [vmem:[%s2578_s1 + $0x10] sm:$0xf] (!%p158_p3)  ;;  %v1983_v61 = vld [vmem:[%s2578_s1 + $0x18] sm:$0xf] (!%p158_p3)  ;;  %vm1252_vm8 = vcmask (!%p158_p3), 752640  }
   0xc   : > { %vm1362_vm9 = vcmask (!%p158_p3), 744448   ;;  %vm1743_vm10 = vcmask (!%p158_p3), 736256  }
   0xe   : > { %s2586_s12 = smov (!%p189_p4, %s2219_s12), 1 }
   0xf   : > { %s2034_s16 = sshll.u32 %s2586_s12, 4 }
  0x10   : > { %s2289_s19 = scalar_lea.vmem %s2577_s0, %s2034_s16  ;;  %s2163_s16 = smul.u32 96, %s2586_s12 }
  0x11   : > { %v211_v2 = vld [vmem:[%s2289_s19 + $0x8] sm:$0xff]  ;;  %v210_v3 = vld [vmem:[%s2289_s19] sm:$0xff] }
  0x12   : > { %v1956_v4 = vcombine.low %v211_v2, %v211_v2  ;;  %v2293_v5 = vcombine.low %v210_v3, %v210_v3  ;;  %v1957_v6 = vcombine.high %v211_v2, %v211_v2  ;;  %v1955_v7 = vcombine.high %v210_v3, %v210_v3  ;;  %v2204_v13 = vld [vmem:[%s2289_s19 + $0x8] ss:$0 sps:$4 sm:$0xff]   ;;  %v1987_v3 = vld [vmem:[%s2578_s1 + $0x1c] sm:$0xf]  ;;  %s2544_s19 = scalar_lea.vmem %s2580_s3, %s2163_s16 }
  0x13   : > { %v351_v23 = vsel %vm242_vm2, %v2204_v13, 0 }
  0x14   : > { %230 = vrot.lane.b32.xlu1 %v1956_v4, %s2232_s20  ;;  %226 = vrot.lane.b32.xlu0 %v2293_v5, %s2232_s20  ;;  %v345_v21 = vsel %vm242_vm2, %v2293_v5, 0 }
  0x18   : > { %232 = vrot.lane.b32.xlu1 %v1957_v6, %s2232_s20  ;;  %228 = vrot.lane.b32.xlu0 %v1955_v7, %s2232_s20 }
  0x1c   : > { %436 = vrot.lane.b32.xlu0 %v2293_v5, %s2233_s21  ;;  %438 = vrot.lane.b32.xlu1 %v1955_v7, %s2233_s21 }
  0x20   : > { %440 = vrot.lane.b32.xlu0 %v1956_v4, %s2233_s21  ;;  %442 = vrot.lane.b32.xlu1 %v1957_v6, %s2233_s21 }
  0x24   : > { %546 = vrot.lane.b32.xlu0 %v2293_v5, %s2234_s22  ;;  %548 = vrot.lane.b32.xlu1 %v1955_v7, %s2234_s22 }
  0x28   : > { %550 = vrot.lane.b32.xlu0 %v1956_v4, %s2234_s22  ;;  %552 = vrot.lane.b32.xlu1 %v1957_v6, %s2234_s22 }
  0x2c   : > { %672 = vrot.lane.b32.xlu0 %v2293_v5, %s2235_s23  ;;  %674 = vrot.lane.b32.xlu1 %v1955_v7, %s2235_s23 }
  0x30   : > { %676 = vrot.lane.b32.xlu0 %v1956_v4, %s2235_s23  ;;  %678 = vrot.lane.b32.xlu1 %v1957_v6, %s2235_s23 }
  0x34   : > { %952 = vrot.lane.b32.xlu0 %v2293_v5, %s2236_s24  ;;  %954 = vrot.lane.b32.xlu1 %v1955_v7, %s2236_s24 }
  0x38   : > { %956 = vrot.lane.b32.xlu0 %v1956_v4, %s2236_s24  ;;  %958 = vrot.lane.b32.xlu1 %v1957_v6, %s2236_s24 }
  0x3c   : > { %1244 = vrot.lane.b32.xlu0 %v2293_v5, %s2237_s25  ;;  %1246 = vrot.lane.b32.xlu1 %v1955_v7, %s2237_s25 }
  0x40   : > { %1248 = vrot.lane.b32.xlu0 %v1956_v4, %s2237_s25  ;;  %1250 = vrot.lane.b32.xlu1 %v1957_v6, %s2237_s25 }
  0x44   : > { %1354 = vrot.lane.b32.xlu0 %v2293_v5, %s2238_s26  ;;  %1356 = vrot.lane.b32.xlu1 %v1955_v7, %s2238_s26 }
  0x48   : > { %1358 = vrot.lane.b32.xlu0 %v1956_v4, %s2238_s26  ;;  %1360 = vrot.lane.b32.xlu1 %v1957_v6, %s2238_s26 }
  0x4c   : > { %1735 = vrot.lane.b32.xlu0 %v2293_v5, %s2239_s27  ;;  %1737 = vrot.lane.b32.xlu1 %v1955_v7, %s2239_s27 }
  0x50   : > { %1739 = vrot.lane.b32.xlu0 %v1956_v4, %s2239_s27  ;;  %1741 = vrot.lane.b32.xlu1 %v1957_v6, %s2239_s27 }
  0x54   : > { %656 = vperm.xlu0 %2199, %v212_v8  }
  0x86   : > { %v231_v9 = vpop.permute.xlu1 %230  ;;  %v227_v10 = vpop.permute.xlu0 %226 }
  0x8a   : > { %v233_v11 = vpop.permute.xlu1 %232  ;;  %v229_v12 = vpop.permute.xlu0 %228 }
  0x8b   : > { %v2307_v14 = vsel %vm234_vm1, %v229_v12, %v231_v9  ;;  %v235_v15 = vsel %vm234_vm1, %v227_v10, %v229_v12  ;;  %v237_v16 = vsel %vm234_vm1, %v231_v9, %v233_v11 }
  0x8c   : > { %1958 = vmatprep.subr.msk.bf16.mxu0 %vm242_vm2, %v2307_v14  ;;  %v2312_v17 = vsel %vm242_vm2, %v235_v15, 0  ;;  %v2315_v18 = vsel %vm242_vm2, %v237_v16, 0 }
  0x8d   : > { %253 = vmatpush1.bf16.msra.mxu0 %v2312_v17  ;;  %2068 = vmatpush3.bf16.msra.mxu1 %v2315_v18 }
  0x8e   : > { %v437_v20 = vpop.permute.xlu0 %436  ;;  %1964 = vmatprep.subr.msk.bf16.mxu0 %vm242_vm2, %v1955_v7  ;;  %2073 = vmatprep.subr.bf16.mxu1 %v2229_v0  ;;  %v439_v22 = vpop.permute.xlu1 %438  ;;  %v1995_v7 = vld [vmem:[%s2578_s1 + $0x24] sm:$0xf] }
  0x8f   : > { %v445_v26 = vsel %vm444_vm4, %v437_v20, %v439_v22 }
  0x90   : > { %1959 = vmatmul.mubr.msk.bf16.vlgmr.msra.gmra.mrb[0].mxu0 %vm238_vm3, %v1953_v19  ;;  %2070 = vmatmul.mubr.msk.bf16.vlgmr.msra.gmra.mrb[0].mxu1 %vm238_vm3, %v1953_v19  ;;  %v2341_v30 = vsel %vm242_vm2, %v445_v26, 0 }
  0x91   : > { %354 = vmatpush1.bf16.msra.mxu0 %v345_v21  ;;  %2074 = vmatpush3.bf16.msra.mxu1 %v351_v23  ;;  %v2002_v21 = vld [vmem:[%s2578_s1 + $0x28] sm:$0xf] }
  0x92   : > { %v441_v24 = vpop.permute.xlu0 %440  ;;  %v443_v25 = vpop.permute.xlu1 %442  ;;  %385 = vmatprep.mubr.bf16.mxu0 %v2230_v1  ;;  %2075 = vmatprep.mubr.msk.bf16.mxu1 %vm2231_vm0, %v2229_v0 }
  0x93   : > { %v2332_v27 = vsel %vm444_vm4, %v439_v22, %v441_v24  ;;  %v447_v28 = vsel %vm444_vm4, %v441_v24, %v443_v25  ;;  %2079 = vmatprep.subr.bf16.mxu1 %v2229_v0  ;;  %v2006_v24 = vld [vmem:[%s2578_s1 + $0x2c] sm:$0xf]  ;;  %v2014_v25 = vld [vmem:[%s2578_s1 + $0x34] sm:$0xf] }
  0x94   : > { %1968 = vmatprep.subr.msk.bf16.mxu0 %vm242_vm2, %v2332_v27  ;;  %v2344_v31 = vsel %vm242_vm2, %v447_v28, 0 }
  0x96   : > { %v547_v32 = vpop.permute.xlu0 %546  ;;  %v549_v33 = vpop.permute.xlu1 %548 }
  0x97   : > { %v555_v36 = vsel %vm554_vm5, %v547_v32, %v549_v33 }
  0x98   : > { %1965 = vmatmul.mubr.msk.bf16.vlgmr.msra.gmra.mrb[4].mxu0 %vm238_vm3, %v213_v29  ;;  %2076 = vmatmul.mubr.msk.bf16.vlgmr.msra.gmra.mrb[4].mxu1 %vm238_vm3, %v213_v29  ;;  %v2362_v40 = vsel %vm242_vm2, %v555_v36, 0  ;;  %v2013_v29 = vld [vmem:[%s2578_s1 + $0x30] sm:$0xf] }
  0x99   : > { %461 = vmatpush1.bf16.msra.mxu0 %v2341_v30  ;;  %2080 = vmatpush3.bf16.msra.mxu1 %v2344_v31 }
  0x9a   : > { %v551_v34 = vpop.permute.xlu0 %550  ;;  %v553_v35 = vpop.permute.xlu1 %552  ;;  %492 = vmatprep.mubr.bf16.mxu0 %v2230_v1  ;;  %2081 = vmatprep.mubr.msk.bf16.mxu1 %vm2231_vm0, %v2229_v0 }
  0x9b   : > { %v2353_v37 = vsel %vm554_vm5, %v549_v33, %v551_v34  ;;  %v557_v38 = vsel %vm554_vm5, %v551_v34, %v553_v35  ;;  %2085 = vmatprep.subr.bf16.mxu1 %v2229_v0  ;;  %v2021_v34 = vld [vmem:[%s2578_s1 + $0x38] sm:$0xf] }
  0x9c   : > { %1972 = vmatprep.subr.msk.bf16.mxu0 %vm242_vm2, %v2353_v37  ;;  %v2365_v41 = vsel %vm242_vm2, %v557_v38, 0 }
  0x9e   : > { %v673_v42 = vpop.permute.xlu0 %672  ;;  %v675_v43 = vpop.permute.xlu1 %674 }
  0x9f   : > { %v681_v46 = vsel %vm680_vm6, %v673_v42, %v675_v43 }
  0xa0   : > { %1969 = vmatmul.mubr.msk.bf16.vlgmr.msra.gmra.mrb[8].mxu0 %vm238_vm3, %v1967_v39  ;;  %2082 = vmatmul.mubr.msk.bf16.vlgmr.msra.gmra.mrb[8].mxu1 %vm238_vm3, %v1967_v39  ;;  %v688_v50 = vsel %vm242_vm2, %v681_v46, 0 }
  0xa1   : > { %571 = vmatpush1.bf16.msra.mxu0 %v2362_v40  ;;  %2086 = vmatpush3.bf16.msra.mxu1 %v2365_v41 }
  0xa2   : > { %v677_v44 = vpop.permute.xlu0 %676  ;;  %v679_v45 = vpop.permute.xlu1 %678  ;;  %602 = vmatprep.mubr.bf16.mxu0 %v2230_v1  ;;  %2087 = vmatprep.mubr.msk.bf16.mxu1 %vm2231_vm0, %v2229_v0 }
  0xa3   : > { %v682_v47 = vsel %vm680_vm6, %v675_v43, %v677_v44  ;;  %v683_v48 = vsel %vm680_vm6, %v677_v44, %v679_v45  ;;  %2091 = vmatprep.subr.bf16.mxu1 %v2229_v0 }
  0xa4   : > { %1977 = vmatprep.subr.msk.bf16.mxu0 %vm242_vm2, %v682_v47  ;;  %v694_v51 = vsel %vm242_vm2, %v683_v48, 0 }
  0xa6   : > { %v953_v53 = vpop.permute.xlu0 %952  ;;  %v955_v54 = vpop.permute.xlu1 %954 }
  0xa7   : > { %v961_v59 = vsel %vm960_vm7, %v953_v53, %v955_v54 }
  0xa8   : > { %1973 = vmatmul.mubr.msk.bf16.vlgmr.msra.gmra.mrb[12].mxu0 %vm238_vm3, %v1971_v49  ;;  %2088 = vmatmul.mubr.msk.bf16.vlgmr.msra.gmra.mrb[12].mxu1 %vm238_vm3, %v1971_v49  ;;  %v2421_v62 = vsel %vm242_vm2, %v961_v59, 0 }
  0xa9   : > { %697 = vmatpush1.bf16.msra.mxu0 %v688_v50  ;;  %2092 = vmatpush3.bf16.msra.mxu1 %v694_v51 }
  0xaa   : > { %1980 = vmatprep.subr.msk.bf16.mxu0 %vm242_vm2, %v2307_v14  ;;  %728 = vmatprep.mubr.bf16.mxu0 %v2230_v1  ;;  %v957_v55 = vpop.permute.xlu0 %956  ;;  %v959_v58 = vpop.permute.xlu1 %958  ;;  %v1994_v14 = vld [vmem:[%s2578_s1 + $0x20] sm:$0xf] }
  0xab   : > { %2093 = vmatprep.mubr.msk.bf16.mxu1 %vm2231_vm0, %v2229_v0  ;;  %2097 = vmatprep.subr.bf16.mxu1 %v2229_v0  ;;  %v2405_v57 = vsel %vm960_vm7, %v955_v54, %v957_v55  ;;  %v963_v60 = vsel %vm960_vm7, %v957_v55, %v959_v58 }
  0xac   : > { %v2424_v63 = vsel %vm242_vm2, %v963_v60, 0 }
  0xae   : > { %v1245_v2 = vpop.permute.xlu0 %1244  ;;  %v1247_v4 = vpop.permute.xlu1 %1246 }
  0xaf   : > { %v1253_v11 = vsel %vm1252_vm8, %v1245_v2, %v1247_v4 }
  0xb0   : > { %1978 = vmatmul.mubr.msk.bf16.vlgmr.msra.gmra.mrb[16].mxu0 %vm238_vm3, %v1976_v52  ;;  %2094 = vmatmul.mubr.msk.bf16.vlgmr.msra.gmra.mrb[16].mxu1 %vm238_vm3, %v1976_v52  ;;  %v1260_v15 = vsel %vm242_vm2, %v1253_v11, 0 }
  0xb1   : > { %781 = vmatpush1.bf16.msra.mxu0 %v2312_v17  ;;  %2098 = vmatpush3.bf16.msra.mxu1 %v2315_v18 }
  0xb2   : > { %1984 = vmatprep.subr.msk.bf16.mxu0 %vm242_vm2, %v2353_v37  ;;  %812 = vmatprep.mubr.bf16.mxu0 %v2230_v1  ;;  %v1249_v5 = vpop.permute.xlu0 %1248  ;;  %v1251_v6 = vpop.permute.xlu1 %1250 }
  0xb3   : > { %2099 = vmatprep.mubr.msk.bf16.mxu1 %vm2231_vm0, %v2229_v0  ;;  %2103 = vmatprep.subr.bf16.mxu1 %v2229_v0  ;;  %v1254_v9 = vsel %vm1252_vm8, %v1247_v4, %v1249_v5  ;;  %v1255_v12 = vsel %vm1252_vm8, %v1249_v5, %v1251_v6 }
  0xb4   : > { %v1266_v16 = vsel %vm242_vm2, %v1255_v12, 0 }
  0xb6   : > { %v1355_v8 = vpop.permute.xlu0 %1354  ;;  %v1357_v10 = vpop.permute.xlu1 %1356 }
  0xb7   : > { %v1363_v19 = vsel %vm1362_vm9, %v1355_v8, %v1357_v10 }
  0xb8   : > { %1981 = vmatmul.mubr.msk.bf16.vlgmr.msra.gmra.mrb[20].mxu0 %vm238_vm3, %v1975_v56  ;;  %2100 = vmatmul.mubr.msk.bf16.vlgmr.msra.gmra.mrb[20].mxu1 %vm238_vm3, %v1975_v56  ;;  %v1370_v22 = vsel %vm242_vm2, %v1363_v19, 0 }
  0xb9   : > { %867 = vmatpush1.bf16.msra.mxu0 %v2362_v40  ;;  %2104 = vmatpush3.bf16.msra.mxu1 %v2365_v41 }
  0xba   : > { %1988 = vmatprep.subr.msk.bf16.mxu0 %vm242_vm2, %v2405_v57  ;;  %898 = vmatprep.mubr.bf16.mxu0 %v2230_v1  ;;  %v1359_v13 = vpop.permute.xlu0 %1358  ;;  %v1361_v18 = vpop.permute.xlu1 %1360 }
  0xbb   : > { %2105 = vmatprep.mubr.msk.bf16.mxu1 %vm2231_vm0, %v2229_v0  ;;  %2109 = vmatprep.subr.bf16.mxu1 %v2229_v0  ;;  %v1364_v17 = vsel %vm1362_vm9, %v1357_v10, %v1359_v13  ;;  %v1365_v20 = vsel %vm1362_vm9, %v1359_v13, %v1361_v18 }
  0xbc   : > { %v1376_v23 = vsel %vm242_vm2, %v1365_v20, 0 }
  0xbe   : > { %v1736_v26 = vpop.permute.xlu0 %1735 }
  0xc0   : > { %1985 = vmatmul.mubr.msk.bf16.vlgmr.msra.gmra.mrb[24].mxu0 %vm238_vm3, %v1983_v61  ;;  %2106 = vmatmul.mubr.msk.bf16.vlgmr.msra.gmra.mrb[24].mxu1 %vm238_vm3, %v1983_v61 }
  0xc1   : > { %977 = vmatpush1.bf16.msra.mxu0 %v2421_v62  ;;  %2110 = vmatpush3.bf16.msra.mxu1 %v2424_v63 }
  0xc2   : > { %1996 = vmatprep.subr.msk.bf16.mxu0 %vm242_vm2, %v2353_v37  ;;  %1008 = vmatprep.mubr.bf16.mxu0 %v2230_v1  ;;  %v1740_v28 = vpop.permute.xlu0 %1739 }
  0xc3   : > { %2111 = vmatprep.mubr.msk.bf16.mxu1 %vm2231_vm0, %v2229_v0  ;;  %2115 = vmatprep.subr.bf16.mxu1 %v2229_v0 }
  0xc8   : > { %1989 = vmatmul.mubr.msk.bf16.vlgmr.msra.gmra.mrb[28].mxu0 %vm238_vm3, %v1987_v3  ;;  %2112 = vmatmul.mubr.msk.bf16.vlgmr.msra.gmra.mrb[28].mxu1 %vm238_vm3, %v1987_v3 }
  0xc9   : > { %1078 = vmatpush1.bf16.msra.mxu0 %v2362_v40  ;;  %2116 = vmatpush3.bf16.msra.mxu1 %v2365_v41 }
  0xca   : > { %1999 = vmatprep.subr.msk.bf16.mxu0 %vm242_vm2, %v2332_v27  ;;  %1109 = vmatprep.mubr.bf16.mxu0 %v2230_v1  ;;  %v1738_v27 = vpop.permute.xlu1 %1737 }
  0xcb   : > { %2117 = vmatprep.mubr.msk.bf16.mxu1 %vm2231_vm0, %v2229_v0  ;;  %2121 = vmatprep.subr.bf16.mxu1 %v2229_v0  ;;  %v1744_v32 = vsel %vm1743_vm10, %v1736_v26, %v1738_v27 }
  0xcc   : > { %v1751_v35 = vsel %vm242_vm2, %v1744_v32, 0 }
  0xd0   : > { %1997 = vmatmul.mubr.msk.bf16.vlgmr.msra.gmra.mrb[32].mxu0 %vm238_vm3, %v1995_v7  ;;  %2118 = vmatmul.mubr.msk.bf16.vlgmr.msra.gmra.mrb[32].mxu1 %vm238_vm3, %v1995_v7 }
  0xd1   : > { %1162 = vmatpush1.bf16.msra.mxu0 %v2341_v30  ;;  %2122 = vmatpush3.bf16.msra.mxu1 %v2344_v31  ;;  %v1745_v30 = vsel %vm1743_vm10, %v1738_v27, %v1740_v28  ;;  %v1742_v31 = vpop.permute.xlu1 %1741 }
  0xd2   : > { %2003 = vmatprep.subr.msk.bf16.mxu0 %vm242_vm2, %v1254_v9  ;;  %1193 = vmatprep.mubr.bf16.mxu0 %v2230_v1  ;;  %v1746_v33 = vsel %vm1743_vm10, %v1740_v28, %v1742_v31 }
  0xd3   : > { %2123 = vmatprep.mubr.msk.bf16.mxu1 %vm2231_vm0, %v2229_v0  ;;  %2127 = vmatprep.subr.bf16.mxu1 %v2229_v0  ;;  %v1757_v36 = vsel %vm242_vm2, %v1746_v33, 0  ;;  %v2536_v4 = vpop.permute.xlu0 %656 }
  0xd8   : > { %2000 = vmatmul.mubr.msk.bf16.vlgmr.msra.gmra.mrb[36].mxu0 %vm238_vm3, %v1994_v14  ;;  %2124 = vmatmul.mubr.msk.bf16.vlgmr.msra.gmra.mrb[36].mxu1 %vm238_vm3, %v1994_v14 }
  0xd9   : > { %1269 = vmatpush1.bf16.msra.mxu0 %v1260_v15  ;;  %2128 = vmatpush3.bf16.msra.mxu1 %v1266_v16 }
  0xda   : > { %2007 = vmatprep.subr.msk.bf16.mxu0 %vm242_vm2, %v1364_v17  ;;  %1300 = vmatprep.mubr.bf16.mxu0 %v2230_v1 }
  0xdb   : > { %2129 = vmatprep.mubr.msk.bf16.mxu1 %vm2231_vm0, %v2229_v0  ;;  %2133 = vmatprep.subr.bf16.mxu1 %v2229_v0 }
  0xe0   : > { %2004 = vmatmul.mubr.msk.bf16.vlgmr.msra.gmra.mrb[40].mxu0 %vm238_vm3, %v2002_v21  ;;  %2130 = vmatmul.mubr.msk.bf16.vlgmr.msra.gmra.mrb[40].mxu1 %vm238_vm3, %v2002_v21 }
  0xe1   : > { %1379 = vmatpush1.bf16.msra.mxu0 %v1370_v22  ;;  %2134 = vmatpush3.bf16.msra.mxu1 %v1376_v23 }
  0xe2   : > { %2015 = vmatprep.subr.msk.bf16.mxu0 %vm242_vm2, %v2405_v57  ;;  %1410 = vmatprep.mubr.bf16.mxu0 %v2230_v1 }
  0xe3   : > { %2135 = vmatprep.mubr.msk.bf16.mxu1 %vm2231_vm0, %v2229_v0  ;;  %2139 = vmatprep.subr.bf16.mxu1 %v2229_v0 }
  0xe8   : > { %2008 = vmatmul.mubr.msk.bf16.vlgmr.msra.gmra.mrb[44].mxu0 %vm238_vm3, %v2006_v24  ;;  %2136 = vmatmul.mubr.msk.bf16.vlgmr.msra.gmra.mrb[44].mxu1 %vm238_vm3, %v2006_v24 }
  0xe9   : > { %1480 = vmatpush1.bf16.msra.mxu0 %v2421_v62  ;;  %2140 = vmatpush3.bf16.msra.mxu1 %v2424_v63 }
  0xea   : > { %2018 = vmatprep.subr.msk.bf16.mxu0 %vm242_vm2, %v2353_v37  ;;  %1511 = vmatprep.mubr.bf16.mxu0 %v2230_v1  ;;  %v2025_v37 = vld [vmem:[%s2578_s1 + $0x3c] sm:$0xf] }
  0xeb   : > { %2141 = vmatprep.mubr.msk.bf16.mxu1 %vm2231_vm0, %v2229_v0  ;;  %2145 = vmatprep.subr.bf16.mxu1 %v2229_v0 }
  0xf0   : > { %2016 = vmatmul.mubr.msk.bf16.vlgmr.msra.gmra.mrb[48].mxu0 %vm238_vm3, %v2014_v25  ;;  %2142 = vmatmul.mubr.msk.bf16.vlgmr.msra.gmra.mrb[48].mxu1 %vm238_vm3, %v2014_v25 }
  0xf1   : > { %1564 = vmatpush1.bf16.msra.mxu0 %v2362_v40  ;;  %2146 = vmatpush3.bf16.msra.mxu1 %v2365_v41 }
  0xf2   : > { %2022 = vmatprep.subr.msk.bf16.mxu0 %vm242_vm2, %v1364_v17  ;;  %1595 = vmatprep.mubr.bf16.mxu0 %v2230_v1 }
  0xf3   : > { %2147 = vmatprep.mubr.msk.bf16.mxu1 %vm2231_vm0, %v2229_v0  ;;  %2151 = vmatprep.subr.bf16.mxu1 %v2229_v0 }
  0xf8   : > { %2019 = vmatmul.mubr.msk.bf16.vlgmr.msra.gmra.mrb[52].mxu0 %vm238_vm3, %v2013_v29  ;;  %2148 = vmatmul.mubr.msk.bf16.vlgmr.msra.gmra.mrb[52].mxu1 %vm238_vm3, %v2013_v29 }
  0xf9   : > { %1650 = vmatpush1.bf16.msra.mxu0 %v1370_v22  ;;  %2152 = vmatpush3.bf16.msra.mxu1 %v1376_v23 }
  0xfa   : > { %2026 = vmatprep.subr.msk.bf16.mxu0 %vm242_vm2, %v1745_v30  ;;  %1681 = vmatprep.mubr.bf16.mxu0 %v2230_v1 }
  0xfb   : > { %2153 = vmatprep.mubr.msk.bf16.mxu1 %vm2231_vm0, %v2229_v0  ;;  %2157 = vmatprep.subr.bf16.mxu1 %v2229_v0 }
 0x100   : > { %2023 = vmatmul.mubr.msk.bf16.vlgmr.msra.gmra.mrb[56].mxu0 %vm238_vm3, %v2021_v34  ;;  %2154 = vmatmul.mubr.msk.bf16.vlgmr.msra.gmra.mrb[56].mxu1 %vm238_vm3, %v2021_v34 }
 0x101   : > { %1760 = vmatpush1.bf16.msra.mxu0 %v1751_v35  ;;  %2158 = vmatpush3.bf16.msra.mxu1 %v1757_v36 }
 0x102   : > { %1791 = vmatprep.mubr.bf16.mxu0 %v2230_v1  ;;  %2159 = vmatprep.mubr.msk.bf16.mxu1 %vm2231_vm0, %v2229_v0 }
 0x108   : > { %2027 = vmatmul.mubr.msk.bf16.vlgmr.msra.gmra.mrb[60].mxu0 %vm238_vm3, %v2025_v37  ;;  %2160 = vmatmul.mubr.msk.bf16.vlgmr.msra.gmra.mrb[60].mxu1 %vm238_vm3, %v2025_v37 }
 0x163   : > { %v286_v38 = vpop.f32.mrb[0].mxu0  ;;  %v327_v39 = vpop.f32.mrb[0].mxu1 }
 0x164   : > { %v288_v40 = vpop.f32.mrb[1].mxu0  ;;  %v2071_v41 = vpop.f32.mrb[1].mxu1 }
 0x165   : > { %v290_v42 = vpop.f32.mrb[2].mxu0  ;;  %v330_v43 = vpop.f32.mrb[2].mxu1 }
 0x166   : > { %v291_v44 = vpop.f32.mrb[3].mxu0  ;;  %v2072_v45 = vpop.f32.mrb[3].mxu1 }
 0x16b   : > { %v387_v1 = vpop.f32.mrb[4].mxu0  ;;  %v428_v46 = vpop.f32.mrb[4].mxu1 }
 0x16c   : > { %v388_v47 = vadd.f32 %v387_v1, %v286_v38  ;;  %v429_v0 = vadd.f32 %v428_v46, %v327_v39  ;;  %v389_v48 = vpop.f32.mrb[5].mxu0  ;;  %v2077_v49 = vpop.f32.mrb[5].mxu1 }
 0x16d   : > { %v390_v50 = vadd.f32 %v389_v48, %v288_v40  ;;  %v391_v51 = vpop.f32.mrb[6].mxu0  ;;  %v431_v52 = vpop.f32.mrb[6].mxu1 }
 0x16e   : > { %v392_v53 = vpop.f32.mrb[7].mxu0  ;;  %v2078_v54 = vpop.f32.mrb[7].mxu1 }
 0x173   : > { %v494_v55 = vpop.f32.mrb[8].mxu0  ;;  %v535_v56 = vpop.f32.mrb[8].mxu1 }
 0x174   : > { %v541_v57 = vadd.f32 %v494_v55, %v388_v47  ;;  %v543_v58 = vadd.f32 %v535_v56, %v429_v0  ;;  %v496_v59 = vpop.f32.mrb[9].mxu0  ;;  %v2083_v60 = vpop.f32.mrb[9].mxu1 }
 0x175   : > { %v542_v61 = vadd.f32 %v496_v59, %v390_v50  ;;  %v498_v62 = vpop.f32.mrb[10].mxu0  ;;  %v538_v63 = vpop.f32.mrb[10].mxu1 }
 0x176   : > { %v499_v2 = vpop.f32.mrb[11].mxu0  ;;  %v2084_v3 = vpop.f32.mrb[11].mxu1 }
 0x17b   : > { %v604_v5 = vpop.f32.mrb[12].mxu0  ;;  %v645_v6 = vpop.f32.mrb[12].mxu1 }
 0x17c   : > { %v651_v7 = vadd.f32 %v604_v5, %v541_v57  ;;  %v653_v8 = vadd.f32 %v645_v6, %v543_v58  ;;  %v606_v9 = vpop.f32.mrb[13].mxu0  ;;  %v2089_v10 = vpop.f32.mrb[13].mxu1 }
 0x17d   : > { %v652_v11 = vadd.f32 %v606_v9, %v542_v61  ;;  %v608_v12 = vpop.f32.mrb[14].mxu0  ;;  %v648_v13 = vpop.f32.mrb[14].mxu1 }
 0x17e   : > { %v659_v14 = vadd.f32 %v2536_v4, %v651_v7  ;;  %v661_v15 = vadd.f32 %v2536_v4, %v653_v8  ;;  %v609_v16 = vpop.f32.mrb[15].mxu0  ;;  %v2090_v17 = vpop.f32.mrb[15].mxu1 }
 0x17f   : > { %v660_v18 = vadd.f32 %v2536_v4, %v652_v11 }
 0x180   : > { %v662_v19 = vmax.f32 %v659_v14, 0.0  ;;  %v664_v20 = vmax.f32 %v661_v15, 0.0 }
 0x181   : > { %v663_v21 = vmax.f32 %v660_v18, 0.0 }
 0x182   : > { %665 = vst [vmem:[%s2544_s19] sm:$0xff] %v662_v19  ;;  %667 = vst [vmem:[%s2544_s19 + $0x10] sm:$0xff] %v664_v20 }
 0x183   : > { %666 = vst [vmem:[%s2544_s19 + $0x8] sm:$0xff] %v663_v21  ;;  %v730_v22 = vpop.f32.mrb[16].mxu0  ;;  %v771_v23 = vpop.f32.mrb[16].mxu1 }
 0x184   : > { %v732_v24 = vpop.f32.mrb[17].mxu0  ;;  %v2095_v25 = vpop.f32.mrb[17].mxu1 }
 0x185   : > { %v734_v26 = vpop.f32.mrb[18].mxu0  ;;  %v774_v27 = vpop.f32.mrb[18].mxu1 }
 0x186   : > { %v735_v28 = vpop.f32.mrb[19].mxu0  ;;  %v2096_v29 = vpop.f32.mrb[19].mxu1 }
 0x18b   : > { %v814_v30 = vpop.f32.mrb[20].mxu0  ;;  %v855_v31 = vpop.f32.mrb[20].mxu1 }
 0x18c   : > { %v815_v32 = vadd.f32 %v814_v30, %v730_v22  ;;  %v856_v33 = vadd.f32 %v855_v31, %v771_v23  ;;  %v816_v34 = vpop.f32.mrb[21].mxu0  ;;  %v2101_v35 = vpop.f32.mrb[21].mxu1 }
 0x18d   : > { %v817_v36 = vadd.f32 %v816_v34, %v732_v24  ;;  %v818_v37 = vpop.f32.mrb[22].mxu0  ;;  %v858_v38 = vpop.f32.mrb[22].mxu1 }
 0x18e   : > { %v819_v39 = vpop.f32.mrb[23].mxu0  ;;  %v2102_v40 = vpop.f32.mrb[23].mxu1 }
 0x193   : > { %v900_v41 = vpop.f32.mrb[24].mxu0  ;;  %v941_v42 = vpop.f32.mrb[24].mxu1 }
 0x194   : > { %v947_v43 = vadd.f32 %v900_v41, %v815_v32  ;;  %v949_v44 = vadd.f32 %v941_v42, %v856_v33  ;;  %v902_v45 = vpop.f32.mrb[25].mxu0  ;;  %v2107_v1 = vpop.f32.mrb[25].mxu1 }
 0x195   : > { %v948_v46 = vadd.f32 %v902_v45, %v817_v36  ;;  %v904_v47 = vpop.f32.mrb[26].mxu0  ;;  %v944_v0 = vpop.f32.mrb[26].mxu1 }
 0x196   : > { %v905_v48 = vpop.f32.mrb[27].mxu0  ;;  %v2108_v49 = vpop.f32.mrb[27].mxu1 }
 0x19b   : > { %v1010_v50 = vpop.f32.mrb[28].mxu0  ;;  %v1051_v51 = vpop.f32.mrb[28].mxu1 }
 0x19c   : > { %v1057_v52 = vadd.f32 %v1010_v50, %v947_v43  ;;  %v1059_v53 = vadd.f32 %v1051_v51, %v949_v44  ;;  %v1012_v54 = vpop.f32.mrb[29].mxu0  ;;  %v2113_v55 = vpop.f32.mrb[29].mxu1 }
 0x19d   : > { %v1058_v56 = vadd.f32 %v1012_v54, %v948_v46  ;;  %v1014_v57 = vpop.f32.mrb[30].mxu0  ;;  %v1054_v58 = vpop.f32.mrb[30].mxu1 }
 0x19e   : > { %v1060_v59 = vadd.f32 %v1057_v52, %v2536_v4  ;;  %v1062_v60 = vadd.f32 %v1059_v53, %v2536_v4  ;;  %v1015_v61 = vpop.f32.mrb[31].mxu0  ;;  %v2114_v62 = vpop.f32.mrb[31].mxu1 }
 0x19f   : > { %v1061_v63 = vadd.f32 %v1058_v56, %v2536_v4 }
 0x1a0   : > { %v1063_v2 = vmax.f32 %v1060_v59, 0.0  ;;  %v1065_v3 = vmax.f32 %v1062_v60, 0.0 }
 0x1a1   : > { %v1064_v5 = vmax.f32 %v1061_v63, 0.0 }
 0x1a2   : > { %1991 = vst [vmem:[%s2544_s19 + $0x18] sm:$0xff] %v1063_v2  ;;  %1993 = vst [vmem:[%s2544_s19 + $0x28] sm:$0xff] %v1065_v3 }
 0x1a3   : > { %1992 = vst [vmem:[%s2544_s19 + $0x20] sm:$0xff] %v1064_v5  ;;  %v1111_v6 = vpop.f32.mrb[32].mxu0  ;;  %v1152_v7 = vpop.f32.mrb[32].mxu1 }
 0x1a4   : > { %v1113_v8 = vpop.f32.mrb[33].mxu0  ;;  %v2119_v9 = vpop.f32.mrb[33].mxu1 }
 0x1a5   : > { %v1115_v10 = vpop.f32.mrb[34].mxu0  ;;  %v1155_v11 = vpop.f32.mrb[34].mxu1 }
 0x1a6   : > { %v1116_v12 = vpop.f32.mrb[35].mxu0  ;;  %v2120_v13 = vpop.f32.mrb[35].mxu1 }
 0x1ab   : > { %v1195_v14 = vpop.f32.mrb[36].mxu0  ;;  %v1236_v15 = vpop.f32.mrb[36].mxu1 }
 0x1ac   : > { %v1196_v16 = vadd.f32 %v1195_v14, %v1111_v6  ;;  %v1237_v17 = vadd.f32 %v1236_v15, %v1152_v7  ;;  %v1197_v18 = vpop.f32.mrb[37].mxu0  ;;  %v2125_v19 = vpop.f32.mrb[37].mxu1 }
 0x1ad   : > { %v1198_v20 = vadd.f32 %v1197_v18, %v1113_v8  ;;  %v1199_v21 = vpop.f32.mrb[38].mxu0  ;;  %v1239_v22 = vpop.f32.mrb[38].mxu1 }
 0x1ae   : > { %v1200_v23 = vpop.f32.mrb[39].mxu0  ;;  %v2126_v24 = vpop.f32.mrb[39].mxu1 }
 0x1b3   : > { %v1302_v25 = vpop.f32.mrb[40].mxu0  ;;  %v1343_v26 = vpop.f32.mrb[40].mxu1 }
 0x1b4   : > { %v1349_v27 = vadd.f32 %v1302_v25, %v1196_v16  ;;  %v1351_v28 = vadd.f32 %v1343_v26, %v1237_v17  ;;  %v1304_v29 = vpop.f32.mrb[41].mxu0  ;;  %v2131_v30 = vpop.f32.mrb[41].mxu1 }
 0x1b5   : > { %v1350_v31 = vadd.f32 %v1304_v29, %v1198_v20  ;;  %v1306_v32 = vpop.f32.mrb[42].mxu0  ;;  %v1346_v33 = vpop.f32.mrb[42].mxu1 }
 0x1b6   : > { %v1307_v34 = vpop.f32.mrb[43].mxu0  ;;  %v2132_v35 = vpop.f32.mrb[43].mxu1 }
 0x1bb   : > { %v1412_v36 = vpop.f32.mrb[44].mxu0  ;;  %v1453_v37 = vpop.f32.mrb[44].mxu1 }
 0x1bc   : > { %v1459_v38 = vadd.f32 %v1412_v36, %v1349_v27  ;;  %v1461_v39 = vadd.f32 %v1453_v37, %v1351_v28  ;;  %v1414_v40 = vpop.f32.mrb[45].mxu0  ;;  %v2137_v41 = vpop.f32.mrb[45].mxu1 }
 0x1bd   : > { %v1460_v42 = vadd.f32 %v1414_v40, %v1350_v31  ;;  %v1416_v43 = vpop.f32.mrb[46].mxu0  ;;  %v1456_v44 = vpop.f32.mrb[46].mxu1 }
 0x1be   : > { %v1462_v45 = vadd.f32 %v1459_v38, %v2536_v4  ;;  %v1464_v1 = vadd.f32 %v1461_v39, %v2536_v4  ;;  %v1417_v46 = vpop.f32.mrb[47].mxu0  ;;  %v2138_v47 = vpop.f32.mrb[47].mxu1 }
 0x1bf   : > { %v1463_v0 = vadd.f32 %v1460_v42, %v2536_v4 }
 0x1c0   : > { %v1465_v48 = vmax.f32 %v1462_v45, 0.0  ;;  %v1467_v49 = vmax.f32 %v1464_v1, 0.0 }
 0x1c1   : > { %v1466_v50 = vmax.f32 %v1463_v0, 0.0 }
 0x1c2   : > { %2010 = vst [vmem:[%s2544_s19 + $0x30] sm:$0xff] %v1465_v48  ;;  %2012 = vst [vmem:[%s2544_s19 + $0x40] sm:$0xff] %v1467_v49 }
 0x1c3   : > { %2011 = vst [vmem:[%s2544_s19 + $0x38] sm:$0xff] %v1466_v50  ;;  %v1513_v51 = vpop.f32.mrb[48].mxu0  ;;  %v1554_v52 = vpop.f32.mrb[48].mxu1 }
 0x1c4   : > { %v1515_v53 = vpop.f32.mrb[49].mxu0  ;;  %v2143_v54 = vpop.f32.mrb[49].mxu1 }
 0x1c5   : > { %v1517_v55 = vpop.f32.mrb[50].mxu0  ;;  %v1557_v56 = vpop.f32.mrb[50].mxu1 }
 0x1c6   : > { %v1518_v57 = vpop.f32.mrb[51].mxu0  ;;  %v2144_v58 = vpop.f32.mrb[51].mxu1 }
 0x1cb   : > { %v1597_v59 = vpop.f32.mrb[52].mxu0  ;;  %v1638_v60 = vpop.f32.mrb[52].mxu1 }
 0x1cc   : > { %v1598_v61 = vadd.f32 %v1597_v59, %v1513_v51  ;;  %v1639_v62 = vadd.f32 %v1638_v60, %v1554_v52  ;;  %v1599_v63 = vpop.f32.mrb[53].mxu0  ;;  %v2149_v2 = vpop.f32.mrb[53].mxu1 }
 0x1cd   : > { %v1600_v3 = vadd.f32 %v1599_v63, %v1515_v53  ;;  %v1601_v5 = vpop.f32.mrb[54].mxu0  ;;  %v1641_v6 = vpop.f32.mrb[54].mxu1 }
 0x1ce   : > { %v1602_v7 = vpop.f32.mrb[55].mxu0  ;;  %v2150_v8 = vpop.f32.mrb[55].mxu1 }
 0x1d3   : > { %v1683_v9 = vpop.f32.mrb[56].mxu0  ;;  %v1724_v10 = vpop.f32.mrb[56].mxu1 }
 0x1d4   : > { %v1730_v11 = vadd.f32 %v1683_v9, %v1598_v61  ;;  %v1732_v12 = vadd.f32 %v1724_v10, %v1639_v62  ;;  %v1685_v13 = vpop.f32.mrb[57].mxu0  ;;  %v2155_v14 = vpop.f32.mrb[57].mxu1 }
 0x1d5   : > { %v1731_v15 = vadd.f32 %v1685_v13, %v1600_v3  ;;  %v1687_v16 = vpop.f32.mrb[58].mxu0  ;;  %v1727_v17 = vpop.f32.mrb[58].mxu1 }
 0x1d6   : > { %v1688_v18 = vpop.f32.mrb[59].mxu0  ;;  %v2156_v19 = vpop.f32.mrb[59].mxu1 }
 0x1db   : > { %v1793_v20 = vpop.f32.mrb[60].mxu0  ;;  %v1834_v21 = vpop.f32.mrb[60].mxu1 }
 0x1dc   : > { %v1840_v22 = vadd.f32 %v1793_v20, %v1730_v11  ;;  %v1842_v23 = vadd.f32 %v1834_v21, %v1732_v12  ;;  %v1795_v24 = vpop.f32.mrb[61].mxu0  ;;  %v2161_v25 = vpop.f32.mrb[61].mxu1 }
 0x1dd   : > { %v1841_v26 = vadd.f32 %v1795_v24, %v1731_v15  ;;  %v1797_v27 = vpop.f32.mrb[62].mxu0  ;;  %v1837_v28 = vpop.f32.mrb[62].mxu1 }
 0x1de   : > { %v1843_v29 = vadd.f32 %v1840_v22, %v2536_v4  ;;  %v1845_v30 = vadd.f32 %v1842_v23, %v2536_v4  ;;  %v1798_v31 = vpop.f32.mrb[63].mxu0  ;;  %v2162_v32 = vpop.f32.mrb[63].mxu1 }
 0x1df   : > { %v1844_v33 = vadd.f32 %v1841_v26, %v2536_v4 }
 0x1e0   : > { %v1846_v34 = vmax.f32 %v1843_v29, 0.0  ;;  %v1848_v35 = vmax.f32 %v1845_v30, 0.0 }
 0x1e1   : > { %v1847_v36 = vmax.f32 %v1844_v33, 0.0 }
 0x1e2   : > { %2029 = vst [vmem:[%s2544_s19 + $0x48] sm:$0xff] %v1846_v34  ;;  %2031 = vst [vmem:[%s2544_s19 + $0x58] sm:$0xff] %v1848_v35 }
 0x1e3   : > { %2030 = vst [vmem:[%s2544_s19 + $0x50] sm:$0xff] %v1847_v36 }
 0x1e4 PF: > { %s13_s14 = sadd.s32 1, %s2227_s14   ;;  %s2581_s12 = smov %s2223_s13 }
 0x1e5   : > { %p10_p5 = scmp.ge.s32.totalorder %s13_s14, 4   ;;  %s2582_s13 = smov %s2584_s15 }
 0x1e7   :  { %12 = sbr.rel (!%p10_p5) target bundleno = 2 (0x2), region = 80 }

</bundles_post_ra>
